<compile_context>
chip_gen: v7x
topology: tpu7x:2x2x1
jax: 0.10.0
libtpu: 0.0.40
codegen_flags: <defaults>
</compile_context>

<pallas_src>
import jax
import jax.numpy as jnp
from jax.experimental import pallas as pl
from jax.experimental.pallas import tpu as pltpu

_LANE = 128
_F32_TEMPS = 16  # ~live f32 (row,128) planes in the kernel body (budgeting)

# Folded colour-transform coefficients (Z eliminated, output scales folded in).
_UV_SCALE = 410.0 / 255.0
_CU_R, _CU_G, _CU_B = (4.0 * _UV_SCALE * c for c in (0.4887, 0.3107, 0.2006))
_CV_R, _CV_G, _CV_B = (9.0 * _UV_SCALE * c for c in (0.1762, 0.8130, 0.0108))
_CA_R = 0.4887 + 15.0 * 0.1762 + 3.0 * 0.0001    # A = X + 15Y + 3Z expanded in r,g,b
_CA_G = 0.3107 + 15.0 * 0.8130 + 3.0 * 0.0102
_CA_B = 0.2006 + 15.0 * 0.0108 + 3.0 * 0.9898


def _chroma_kernel(x_ref, y_ref, out_ref):
    """One (batch-chunk, row-tile) grid step.

    x_ref / y_ref : (Bt, 3, Rt, 128) blocks of the lane-densified images.
    out_ref       : (1, 1, 8, 128) f32 partial-sum block (unique per step).
    """

    def uv(ref):
        img = ref[...].astype(jnp.float32)            # cast in-kernel (no HBM round trip)
        r, g, b = img[:, 0], img[:, 1], img[:, 2]     # (Bt, Rt, 128) each
        a = jnp.maximum(_CA_R * r + _CA_G * g + _CA_B * b, 0.0) + 1e-6
        inv_a = pl.reciprocal(a, approx=True)         # EUP slot, shared by u' and v'
        u = (_CU_R * r + _CU_G * g + _CU_B * b) * inv_a
        v = (_CV_R * r + _CV_G * g + _CV_B * b) * inv_a
        return u, v

    u1, v1 = uv(x_ref)
    u2, v2 = uv(y_ref)
    per_pix = 0.5 * (jnp.abs(u1 - u2) + jnp.abs(v1 - v2))      # (Bt, Rt, 128) f32

    bt, rt, lanes = per_pix.shape
    if rt % 8 == 0:
        # Layout-free group-sum down to one vreg: pure VPU adds, no XLU reduce.
        partial = per_pix.reshape(bt * rt // 8, 8, lanes).sum(axis=0)
    else:
        # Tiny-image fallback (rt < 8): one small cross-sublane reduce.
        row = per_pix.sum(axis=0).sum(axis=0, keepdims=True)    # (1, 128)
        sub = jax.lax.broadcasted_iota(jnp.int32, (8, lanes), 0)
        partial = jnp.where(sub == 0, row, 0.0)
    out_ref[...] = partial.reshape(1, 1, 8, lanes)


def _vmem_policy():
    """(per-step tile budget bytes, vmem_limit_bytes), per TPU generation."""
    try:
        vmem = int(pltpu.get_tpu_info().vmem_capacity_bytes)
    except Exception:
        vmem = 0
    if vmem >= 100 * 1024 * 1024:                      # v5e / v6e: 128 MiB VMEM
        return 48 * 1024 * 1024, 96 * 1024 * 1024
    return 16 * 1024 * 1024, 32 * 1024 * 1024          # v7x (64 MiB) or unknown


def _pick_batch_block(B, n_tiles, bt_cap):
    """Largest divisor of B under bt_cap keeping >= 2 grid steps (megacore)."""
    best = 1
    for d in range(1, B + 1):
        if B % d or d > bt_cap:
            continue
        if (B // d) * n_tiles >= 2 or B * n_tiles < 2:
            best = d
    return best


def chroma_func(output, gt):
    """mean(0.5*(|u'(output)-u'(gt)| + |v'(output)-v'(gt)|)) == Chroma_Func."""
    assert output.shape == gt.shape
    B, C, H, W = output.shape
    assert C == 3, "Chroma_Func expects RGB (3-channel) NCHW inputs"

    n_pix = H * W
    itemsize = jnp.dtype(output.dtype).itemsize
    budget, vmem_limit = _vmem_policy()

    # Bytes per (row of 128 px) per batch element per grid step:
    #   2 inputs x 2 pipeline buffers x 3 channels in the input dtype
    #   + ~_F32_TEMPS live f32 temporaries in the body.
    bytes_per_row = _LANE * (2 * 2 * 3 * itemsize + _F32_TEMPS * 4)

    # Row-tile size (in 128-px rows): multiple of 8 unless the image is tiny;
    # prefer an exact divisor of the row count to avoid a wrapper-side pad copy.
    rows_needed = pl.cdiv(n_pix, _LANE)
    rt_cap = max(8, (budget // bytes_per_row) // 8 * 8)
    if rows_needed <= rt_cap:
        rt, n_tiles = rows_needed, 1
    else:
        rt = 0
        t = rt_cap
        min_rt = max(8, rt_cap // 4)
        while t >= min_rt:
            if rows_needed % t == 0:
                rt = t
                break
            t -= 8
        if rt == 0:
            rt = rt_cap               # no good divisor: zero-pad the tail tile
        n_tiles = pl.cdiv(rows_needed, rt)
    rows = rt * n_tiles
    n_pad = rows * _LANE

    # Batch blocking for small images (amortise the ~0.35 us/step overhead).
    bt_cap = max(1, budget // max(rt * bytes_per_row, 1))
    bt = _pick_batch_block(B, n_tiles, bt_cap)

    # Lane-densify: flatten spatial dims, zero-pad up to the tile grid.
    # Padded pixels give u' = v' = 0 for both images -> contribute exactly 0.
    def densify(img):
        flat = img.reshape(B, 3, n_pix)
        if n_pad != n_pix:
            flat = jnp.pad(flat, ((0, 0), (0, 0), (0, n_pad - n_pix)))
        return flat.reshape(B, 3, rows, _LANE)

    x = densify(output)
    y = densify(gt)

    grid = (B // bt, n_tiles)
    in_spec = pl.BlockSpec((bt, 3, rt, _LANE), lambda i, j: (i, 0, j, 0))

    partials = pl.pallas_call(
        _chroma_kernel,
        out_shape=jax.ShapeDtypeStruct((grid[0], grid[1], 8, _LANE), jnp.float32),
        grid=grid,
        in_specs=[in_spec, in_spec],
        out_specs=pl.BlockSpec((1, 1, 8, _LANE), lambda i, j: (i, j, 0, 0)),
        compiler_params=pltpu.CompilerParams(
            dimension_semantics=("parallel", "parallel"),
            vmem_limit_bytes=vmem_limit,
        ),
    )(x, y)

    # Tiny final reduce + mean in JAX; divide by the true pixel count.
    return jnp.sum(partials) / (B * H * W)


def _chroma_ref(output, gt):
    """Pure-JAX transcription of the PyTorch Chroma_Func (sanity check)."""
    def rgb2uv(e, flag):
        r, g, b = e[:, 0], e[:, 1], e[:, 2]
        x = 0.4887 * r + 0.3107 * g + 0.2006 * b
        y = 0.1762 * r + 0.813 * g + 0.0108 * b
        z = 0.0001 * r + 0.0102 * g + 0.9898 * b
        a = jnp.maximum(x + 15.0 * y + 3.0 * z, 0.0) + 1e-6
        out = 4.0 * x / a if flag == 1 else 9.0 * y / a
        return out * 410.0 / 255.0

    loss = 0.5 * (jnp.abs(rgb2uv(output, 1) - rgb2uv(gt, 1))
                  + jnp.abs(rgb2uv(output, -1) - rgb2uv(gt, -1)))
    return jnp.mean(loss)


if __name__ == "__main__":
    key = jax.random.PRNGKey(0)
    k1, k2 = jax.random.split(key)
    B, C, H, W = 2, 3, 16, 16   # RGB images, small spatial size
    output = jax.random.uniform(k1, (B, C, H, W), dtype=jnp.float32)
    gt = jax.random.uniform(k2, (B, C, H, W), dtype=jnp.float32)

    loss = chroma_func(output, gt)
    jax.block_until_ready(loss)

    # Loose tolerance: pl.reciprocal(approx=True) deviates ~1e-3 relative from
    # the exact-division PyTorch reference.
    ref = float(_chroma_ref(output, gt))
    got = float(loss)
    assert abs(got - ref) <= 2e-2 * abs(ref) + 2e-3, (got, ref)

    print("KERNEL_OK")
</pallas_src>

<mosaic_0001>
module attributes {stable_mosaic.version = 11 : i64} {
  func.func @_chroma_kernel(%arg0: i32, %arg1: i32, %arg2: memref<1x3x2x128xf32, #tpu.memory_space<vmem>>, %arg3: memref<1x3x2x128xf32, #tpu.memory_space<vmem>>, %arg4: memref<1x1x8x128xf32, #tpu.memory_space<vmem>>) attributes {dimension_semantics = [#tpu.dimension_semantics<parallel>, #tpu.dimension_semantics<parallel>], iteration_bounds = array<i64: 2, 1>, scalar_prefetch = 0 : i64, scratch_operands = 0 : i64, tpu.core_type = #tpu.core_type<tc>, window_params = [{transform_indices = @transform_0, window_bounds = array<i64: 1, 3, 2, 128>}, {transform_indices = @transform_1, window_bounds = array<i64: 1, 3, 2, 128>}, {transform_indices = @transform_2, window_bounds = array<i64: 1, 1, 8, 128>}]} {
    %c0 = arith.constant 0 : index
    %c0_0 = arith.constant 0 : index
    %c0_1 = arith.constant 0 : index
    %c0_2 = arith.constant 0 : index
    %0 = vector.load %arg2[%c0, %c0_0, %c0_1, %c0_2] : memref<1x3x2x128xf32, #tpu.memory_space<vmem>>, vector<1x3x2x128xf32>
    %1 = vector.extract_strided_slice %0 {offsets = [0, 0, 0, 0], sizes = [1, 1, 2, 128], strides = [1, 1, 1, 1]} : vector<1x3x2x128xf32> to vector<1x1x2x128xf32>
    %2 = vector.shape_cast %1 : vector<1x1x2x128xf32> to vector<1x2x128xf32>
    %3 = vector.extract_strided_slice %0 {offsets = [0, 1, 0, 0], sizes = [1, 1, 2, 128], strides = [1, 1, 1, 1]} : vector<1x3x2x128xf32> to vector<1x1x2x128xf32>
    %4 = vector.shape_cast %3 : vector<1x1x2x128xf32> to vector<1x2x128xf32>
    %5 = vector.extract_strided_slice %0 {offsets = [0, 2, 0, 0], sizes = [1, 1, 2, 128], strides = [1, 1, 1, 1]} : vector<1x3x2x128xf32> to vector<1x1x2x128xf32>
    %6 = vector.shape_cast %5 : vector<1x1x2x128xf32> to vector<1x2x128xf32>
    %cst = arith.constant 3.132000e+00 : f32
    %7 = vector.broadcast %cst : f32 to vector<1x2x128xf32>
    %8 = arith.mulf %7, %2 : vector<1x2x128xf32>
    %cst_3 = arith.constant 1.253630e+01 : f32
    %9 = vector.broadcast %cst_3 : f32 to vector<1x2x128xf32>
    %10 = arith.mulf %9, %4 : vector<1x2x128xf32>
    %11 = arith.addf %8, %10 : vector<1x2x128xf32>
    %cst_4 = arith.constant 3.332000e+00 : f32
    %12 = vector.broadcast %cst_4 : f32 to vector<1x2x128xf32>
    %13 = arith.mulf %12, %6 : vector<1x2x128xf32>
    %14 = arith.addf %11, %13 : vector<1x2x128xf32>
    %cst_5 = arith.constant 0.000000e+00 : f32
    %15 = vector.broadcast %cst_5 : f32 to vector<1x2x128xf32>
    %16 = arith.maximumf %14, %15 : vector<1x2x128xf32>
    %cst_6 = arith.constant 9.99999997E-7 : f32
    %17 = vector.broadcast %cst_6 : f32 to vector<1x2x128xf32>
    %18 = arith.addf %16, %17 : vector<1x2x128xf32>
    %19 = tpu.reciprocal %18 {approx = true} : vector<1x2x128xf32> -> vector<1x2x128xf32>
    %cst_7 = arith.constant 3.14301181 : f32
    %20 = vector.broadcast %cst_7 : f32 to vector<1x2x128xf32>
    %21 = arith.mulf %20, %2 : vector<1x2x128xf32>
    %cst_8 = arith.constant 1.99822748 : f32
    %22 = vector.broadcast %cst_8 : f32 to vector<1x2x128xf32>
    %23 = arith.mulf %22, %4 : vector<1x2x128xf32>
    %24 = arith.addf %21, %23 : vector<1x2x128xf32>
    %cst_9 = arith.constant 1.29013336 : f32
    %25 = vector.broadcast %cst_9 : f32 to vector<1x2x128xf32>
    %26 = arith.mulf %25, %6 : vector<1x2x128xf32>
    %27 = arith.addf %24, %26 : vector<1x2x128xf32>
    %28 = arith.mulf %27, %19 : vector<1x2x128xf32>
    %cst_10 = arith.constant 2.54971766 : f32
    %29 = vector.broadcast %cst_10 : f32 to vector<1x2x128xf32>
    %30 = arith.mulf %29, %2 : vector<1x2x128xf32>
    %cst_11 = arith.constant 11.7645884 : f32
    %31 = vector.broadcast %cst_11 : f32 to vector<1x2x128xf32>
    %32 = arith.mulf %31, %4 : vector<1x2x128xf32>
    %33 = arith.addf %30, %32 : vector<1x2x128xf32>
    %cst_12 = arith.constant 0.15628235 : f32
    %34 = vector.broadcast %cst_12 : f32 to vector<1x2x128xf32>
    %35 = arith.mulf %34, %6 : vector<1x2x128xf32>
    %36 = arith.addf %33, %35 : vector<1x2x128xf32>
    %37 = arith.mulf %36, %19 : vector<1x2x128xf32>
    %c0_13 = arith.constant 0 : index
    %c0_14 = arith.constant 0 : index
    %c0_15 = arith.constant 0 : index
    %c0_16 = arith.constant 0 : index
    %38 = vector.load %arg3[%c0_13, %c0_14, %c0_15, %c0_16] : memref<1x3x2x128xf32, #tpu.memory_space<vmem>>, vector<1x3x2x128xf32>
    %39 = vector.extract_strided_slice %38 {offsets = [0, 0, 0, 0], sizes = [1, 1, 2, 128], strides = [1, 1, 1, 1]} : vector<1x3x2x128xf32> to vector<1x1x2x128xf32>
    %40 = vector.shape_cast %39 : vector<1x1x2x128xf32> to vector<1x2x128xf32>
    %41 = vector.extract_strided_slice %38 {offsets = [0, 1, 0, 0], sizes = [1, 1, 2, 128], strides = [1, 1, 1, 1]} : vector<1x3x2x128xf32> to vector<1x1x2x128xf32>
    %42 = vector.shape_cast %41 : vector<1x1x2x128xf32> to vector<1x2x128xf32>
    %43 = vector.extract_strided_slice %38 {offsets = [0, 2, 0, 0], sizes = [1, 1, 2, 128], strides = [1, 1, 1, 1]} : vector<1x3x2x128xf32> to vector<1x1x2x128xf32>
    %44 = vector.shape_cast %43 : vector<1x1x2x128xf32> to vector<1x2x128xf32>
    %cst_17 = arith.constant 3.132000e+00 : f32
    %45 = vector.broadcast %cst_17 : f32 to vector<1x2x128xf32>
    %46 = arith.mulf %45, %40 : vector<1x2x128xf32>
    %cst_18 = arith.constant 1.253630e+01 : f32
    %47 = vector.broadcast %cst_18 : f32 to vector<1x2x128xf32>
    %48 = arith.mulf %47, %42 : vector<1x2x128xf32>
    %49 = arith.addf %46, %48 : vector<1x2x128xf32>
    %cst_19 = arith.constant 3.332000e+00 : f32
    %50 = vector.broadcast %cst_19 : f32 to vector<1x2x128xf32>
    %51 = arith.mulf %50, %44 : vector<1x2x128xf32>
    %52 = arith.addf %49, %51 : vector<1x2x128xf32>
    %cst_20 = arith.constant 0.000000e+00 : f32
    %53 = vector.broadcast %cst_20 : f32 to vector<1x2x128xf32>
    %54 = arith.maximumf %52, %53 : vector<1x2x128xf32>
    %cst_21 = arith.constant 9.99999997E-7 : f32
    %55 = vector.broadcast %cst_21 : f32 to vector<1x2x128xf32>
    %56 = arith.addf %54, %55 : vector<1x2x128xf32>
    %57 = tpu.reciprocal %56 {approx = true} : vector<1x2x128xf32> -> vector<1x2x128xf32>
    %cst_22 = arith.constant 3.14301181 : f32
    %58 = vector.broadcast %cst_22 : f32 to vector<1x2x128xf32>
    %59 = arith.mulf %58, %40 : vector<1x2x128xf32>
    %cst_23 = arith.constant 1.99822748 : f32
    %60 = vector.broadcast %cst_23 : f32 to vector<1x2x128xf32>
    %61 = arith.mulf %60, %42 : vector<1x2x128xf32>
    %62 = arith.addf %59, %61 : vector<1x2x128xf32>
    %cst_24 = arith.constant 1.29013336 : f32
    %63 = vector.broadcast %cst_24 : f32 to vector<1x2x128xf32>
    %64 = arith.mulf %63, %44 : vector<1x2x128xf32>
    %65 = arith.addf %62, %64 : vector<1x2x128xf32>
    %66 = arith.mulf %65, %57 : vector<1x2x128xf32>
    %cst_25 = arith.constant 2.54971766 : f32
    %67 = vector.broadcast %cst_25 : f32 to vector<1x2x128xf32>
    %68 = arith.mulf %67, %40 : vector<1x2x128xf32>
    %cst_26 = arith.constant 11.7645884 : f32
    %69 = vector.broadcast %cst_26 : f32 to vector<1x2x128xf32>
    %70 = arith.mulf %69, %42 : vector<1x2x128xf32>
    %71 = arith.addf %68, %70 : vector<1x2x128xf32>
    %cst_27 = arith.constant 0.15628235 : f32
    %72 = vector.broadcast %cst_27 : f32 to vector<1x2x128xf32>
    %73 = arith.mulf %72, %44 : vector<1x2x128xf32>
    %74 = arith.addf %71, %73 : vector<1x2x128xf32>
    %75 = arith.mulf %74, %57 : vector<1x2x128xf32>
    %76 = arith.subf %28, %66 : vector<1x2x128xf32>
    %77 = math.absf %76 : vector<1x2x128xf32>
    %78 = arith.subf %37, %75 : vector<1x2x128xf32>
    %79 = math.absf %78 : vector<1x2x128xf32>
    %80 = arith.addf %77, %79 : vector<1x2x128xf32>
    %cst_28 = arith.constant 5.000000e-01 : f32
    %81 = vector.broadcast %cst_28 : f32 to vector<1x2x128xf32>
    %82 = arith.mulf %81, %80 : vector<1x2x128xf32>
    %cst_29 = arith.constant dense<0.000000e+00> : vector<2x128xf32>
    %83 = vector.multi_reduction <add>, %82, %cst_29 [0] : vector<1x2x128xf32> to vector<2x128xf32>
    %cst_30 = arith.constant dense<0.000000e+00> : vector<128xf32>
    %84 = vector.multi_reduction <add>, %83, %cst_30 [0] : vector<2x128xf32> to vector<128xf32>
    %85 = vector.shape_cast %84 : vector<128xf32> to vector<1x128xf32>
    %86 = tpu.iota {dimensions = array<i32: 0>} : vector<8x128xi32>
    %c0_i32 = arith.constant 0 : i32
    %87 = vector.broadcast %c0_i32 : i32 to vector<8x128xi32>
    %88 = arith.cmpi eq, %86, %87 : vector<8x128xi32>
    %cst_31 = arith.constant 0.000000e+00 : f32
    %89 = vector.shape_cast %85 : vector<1x128xf32> to vector<1x128xf32>
    %90 = vector.broadcast %89 : vector<1x128xf32> to vector<8x128xf32>
    %91 = vector.broadcast %cst_31 : f32 to vector<8x128xf32>
    %92 = arith.select %88, %90, %91 : vector<8x128xi1>, vector<8x128xf32>
    %93 = vector.shape_cast %92 : vector<8x128xf32> to vector<1x1x8x128xf32>
    %c0_32 = arith.constant 0 : index
    %c0_33 = arith.constant 0 : index
    %c0_34 = arith.constant 0 : index
    %c0_35 = arith.constant 0 : index
    %94 = vector.load %arg4[%c0_32, %c0_33, %c0_34, %c0_35] : memref<1x1x8x128xf32, #tpu.memory_space<vmem>>, vector<1x1x8x128xf32>
    tpu.vector_store %arg4[%c0_32, %c0_33, %c0_34, %c0_35], %93 {strides = array<i32>} : memref<1x1x8x128xf32, #tpu.memory_space<vmem>>, vector<1x1x8x128xf32>,
    return
  }
  func.func @transform_0(%arg0: i32, %arg1: i32) -> (i32, i32, i32, i32) {
    %c0_i32 = arith.constant 0 : i32
    %c0_i32_0 = arith.constant 0 : i32
    %c0_i32_1 = arith.constant 0 : i32
    return %arg0, %c0_i32, %arg1, %c0_i32_0 : i32, i32, i32, i32
  }
  func.func @transform_1(%arg0: i32, %arg1: i32) -> (i32, i32, i32, i32) {
    %c0_i32 = arith.constant 0 : i32
    %c0_i32_0 = arith.constant 0 : i32
    %c0_i32_1 = arith.constant 0 : i32
    return %arg0, %c0_i32, %arg1, %c0_i32_0 : i32, i32, i32, i32
  }
  func.func @transform_2(%arg0: i32, %arg1: i32) -> (i32, i32, i32, i32) {
    %c0_i32 = arith.constant 0 : i32
    %c0_i32_0 = arith.constant 0 : i32
    %c0_i32_1 = arith.constant 0 : i32
    return %arg0, %arg1, %c0_i32, %c0_i32_0 : i32, i32, i32, i32
  }
}

</mosaic_0001>

<bundles_post_ra>
// kernel: tpu_custom_call.1
= control target key start
LH: loop header
LB: loop body
LE: loop exit
PB: predicated region body
PF: predicated region fallthrough
CT: control target
= control target key end

     0   :  { %7 = vsyncpa [#allocation3], 0  ;;  %s902_s0 = inlined_call_operand.hbm [shape: f32[2,3,2,128], index: 0, kind: input, shape index: {}]   ;;  %s903_s1 = inlined_call_operand.hbm [shape: f32[2,3,2,128], index: 1, kind: input, shape index: {}]   ;;  %s904_s2 = inlined_call_operand.hbm [shape: f32[2,1,8,128], index: 2, kind: output, shape index: {}]  }
   0x1   :  { %9 = vsyncpa [#allocation3 + $0x1], 0 }
   0x2   :  { %10 = vsyncpa [#allocation6], 0 }
   0x3   :  { %12 = vsyncpa [#allocation6 + $0x1], 0 }
   0x4   :  { %13 = vsyncpa [#allocation4], 0 }
   0x5   :  { %15 = vsyncpa [#allocation4 + $0x1], 0  ;;  %s667_s9 = smov 0   ;;  %s669_s10 = smov 0  }
   0x6   :  { %s671_s11 = smov 0   ;;  %s673_s12 = smov 0  }
   0x7   :  { %s675_s13 = smov 0   ;;  %s677_s14 = smov 0  }
   0x8 LB: > { %s409_s15 = sadd.s32 4294967295, %s645_s14   ;;  %s410_s16 = sadd.s32 4294967294, %s645_s14   ;;  %s645_s14 = sphi %s677_s14, %s21_s14   ;;  %s641_s13 = sphi %s675_s13, %s922_s13   ;;  %s637_s12 = sphi %s673_s12, %s921_s12   ;;  %s633_s11 = sphi %s671_s11, %s920_s11   ;;  %s629_s10 = sphi %s669_s10, %s919_s10   ;;  %s625_s9 = sphi %s667_s9, %s918_s9  }
   0x9   : > { %s33_s17 = sadd.s32 1, %s641_s13  ;;  %s42_s18 = sadd.s32 1, %s633_s11 }
   0xa   : > { %p35_p0 = scmp.ge.s32.totalorder %s33_s17, 2  ;;  %p49_p1 = scmp.ne.s32.totalorder %s633_s11, %s629_s10 }
   0xb   : > { %p50_p2 = scmp.eq.s32.totalorder %s645_s14, 0  ;;  %p55_p3 = scmp.ne.s32.totalorder %s629_s10, %s625_s9 }
   0xc   : > { %s924_s17 = smov (%p35_p0, %s33_s17), 0  ;;  %p56_p5 = scmp.eq.s32.totalorder %s409_s15, 0 }
   0xd   : > { %p708_p4 = por %p50_p2, %p49_p1  ;;  %s37_s20 = ssub.s32 %s641_s13, %s924_s17 }
   0xe   : > { %p109_p6 = scmp.eq.s32.totalorder %s409_s15, 1  ;;  %p40_p7 = scmp.eq.s32.totalorder %s37_s20, 0 }
   0xf   : > { %p714_p8 = por %p56_p5, %p55_p3  ;;  %p115_p10 = scmp.eq.s32.totalorder %s410_s16, 1 }
  0x10   : > { %p718_p9 = por %p109_p6, %p49_p1  ;;  %p443_p13 = scmp.lt.s32.totalorder %s645_s14, 2 }
  0x11   : > { %s908_s21 = scalar_select %p714_p8, 1, 0 }
  0x12   : > { %s909_s22 = scalar_select %p718_p9, 1, 0 }
  0x13   : > { %s723_s23 = scalar_select %p40_p7, %s633_s11, %s42_s18  }
  0x14   : > { %p725_p11 = por %p115_p10, %p55_p3  ;;  %s732_s25 = sand.u32 1, %s633_s11  }
  0x15   : > { %s421_s26 = smul.u32 6, %s732_s25  ;;  %p738_p0 = pnand %p443_p13, %p708_p4 }
  0x16   : > { %s910_s24 = scalar_select %p725_p11, 1, 0 }
  0x17   : > { %s422_s27 = smul.u32 96, %s641_s13  ;;  %s139_s4 = scalar_lea.vmem [#allocation2], %s421_s26 }
  0x18   : > { %s147_s5 = sshll.u32 %s139_s4, 4  ;;  %s136_s6 = scalar_lea.sflag [#allocation3], %s732_s25  ;;  %s751_s5 = int_to_ptr.vmem [resolvable:$true] %s147_s5 }
  0x19   : > { %s747_s3 = scalar_lea.hbm %s902_s0, %s422_s27  ;;  %p501_p3 = pneg %p738_p0 }
  0x1a   : > { %s499_s7 = scalar_lea.hbm %s747_s3, 96  ;;  %s504_s16 = scalar_lea.hbm %s902_s0, 192 }
  0x1b   : > { %p500_p2 = scmp.ne.s32.totalorder %s747_s3, %s499_s7  ;;  %p505_p6 = scmp.lt.u32.totalorder %s747_s3, %s902_s0 }
  0x1c   : > { %p506_p7 = scmp.lt.u32.totalorder %s504_s16, %s499_s7  ;;  %p508_p13 = scmp.lt.u32.totalorder %s499_s7, %s747_s3 }
  0x1d   : > { %p502_p4 = pnand %p501_p3, %p500_p2 }
  0x1e   : > { %p507_p10 = por %p506_p7, %p505_p6 }
  0x1f   : > { %p503_p5 = pneg %p502_p4 }
  0x20   : > { %p509_p12 = por %p508_p13, %p507_p10 }
  0x22   : > { %p510_p1 = pnand %p509_p12, %p503_p5 }
  0x24   : > { %513 = shalt.err (!%p510_p1)
}
  0x25   : > { %s514_s20 = scalar_lea.vmem %s751_s5, 96  ;;  %s647_s29 = smov [#allocation2]  }
  0x26   : > { %p515_p2 = scmp.ne.s32.totalorder %s751_s5, %s514_s20  ;;  %s519_s30 = sshll.u32 %s647_s29, 4  ;;  %s520_s30 = int_to_ptr.vmem [resolvable:$false] %s519_s30 }
  0x27   : > { %s521_s4 = scalar_lea.vmem %s520_s30, 192  ;;  %p522_p9 = scmp.lt.s32.totalorder %s751_s5, %s520_s30 }
  0x28   : > { %p517_p4 = pnand %p515_p2, %p501_p3  ;;  %p523_p6 = scmp.lt.s32.totalorder %s521_s4, %s514_s20 }
  0x2a   : > { %p518_p11 = pneg %p517_p4  ;;  %p524_p7 = por %p523_p6, %p522_p9 }
  0x2c   : > { %p525_p10 = pnand %p524_p7, %p518_p11 }
  0x2e   : > { %528 = shalt.err (!%p525_p10)
}
  0x2f   : > { %s648_s7 = smov 32   ;;  %s649_s8 = smov 2  }
  0x30   : > { %435 = dma.hbm_to_vmem [thread:$0]  (!%p738_p0), %s747_s3, 96, %s751_s5, %s136_s6, %s648_s7, %s648_s7, %s649_s8  }
  0x31   : > { %p177_p9 = scmp.lt.s32.totalorder %s645_s14, 3  ;;  %s791_s18 = scalar_lea.hbm %s903_s1, %s422_s27 }
  0x32   : > { %p912_p11 = scmp.ge.s32.totalorder %s645_s14, 1  ;;  %s161_s20 = scalar_lea.vmem [#allocation5], %s421_s26 }
  0x33   : > { %s169_s29 = sshll.u32 %s161_s20, 4  ;;  %s158_s3 = scalar_lea.sflag [#allocation6], %s732_s25  ;;  %s801_s29 = int_to_ptr.vmem [resolvable:$true] %s169_s29 }
  0x34   : > { %p795_p12 = pnand %p912_p11, %p177_p9  ;;  %s529_s5 = scalar_lea.hbm %s791_s18, 96 }
  0x35   : > { %p530_p1 = scmp.ne.s32.totalorder %s791_s18, %s529_s5  ;;  %s534_s30 = scalar_lea.hbm %s903_s1, 192 }
  0x36   : > { %p535_p2 = scmp.lt.u32.totalorder %s791_s18, %s903_s1  ;;  %p536_p4 = scmp.lt.u32.totalorder %s534_s30, %s529_s5 }
  0x37   : > { %p532_p5 = pnand %p530_p1, %p501_p3  ;;  %p538_p7 = scmp.lt.u32.totalorder %s529_s5, %s791_s18 }
  0x38   : > { %p537_p6 = por %p536_p4, %p535_p2 }
  0x39   : > { %p533_p13 = pneg %p532_p5 }
  0x3a   : > { %p539_p10 = por %p538_p7, %p537_p6 }
  0x3c   : > { %p540_p9 = pnand %p539_p10, %p533_p13 }
  0x3e   : > { %543 = shalt.err (!%p540_p9)
}
  0x3f   : > { %s544_s26 = scalar_lea.vmem %s801_s29, 96  ;;  %s650_s16 = smov [#allocation5]  }
  0x40   : > { %p545_p11 = scmp.ne.s32.totalorder %s801_s29, %s544_s26  ;;  %s549_s20 = sshll.u32 %s650_s16, 4  ;;  %s550_s20 = int_to_ptr.vmem [resolvable:$false] %s549_s20 }
  0x41   : > { %s551_s27 = scalar_lea.vmem %s550_s20, 192  ;;  %p552_p8 = scmp.lt.s32.totalorder %s801_s29, %s550_s20 }
  0x42   : > { %p547_p1 = pnand %p545_p11, %p501_p3  ;;  %p553_p2 = scmp.lt.s32.totalorder %s551_s27, %s544_s26 }
  0x44   : > { %p548_p5 = pneg %p547_p1  ;;  %p554_p4 = por %p553_p2, %p552_p8 }
  0x46   : > { %p555_p6 = pnand %p554_p4, %p548_p5 }
  0x48   : > { %558 = shalt.err (!%p555_p6)
}
  0x49   : > { %438 = dma.hbm_to_vmem [thread:$0]  (!%p738_p0), %s791_s18, 96, %s801_s29, %s158_s3, %s648_s7, %s648_s7, %s649_s8  }
  0x4a   : > { %181 = sbr.rel (%p795_p12) target bundleno = 146 (0x92), region = 28  ;;  %s835_s5 = sand.u32 (!%p795_p12), 1, %s629_s10  }
  0x4b   : > { %s425_s6 = smul.u32 (!%p795_p12), 6, %s835_s5  ;;  %s184_s30 = scalar_lea.sflag (!%p795_p12), [#allocation3], %s835_s5 }
  0x4c   : > { %p914_p8 = scmp.ne.s32.totalorder (!%p795_p12), %s908_s21, 0 }
  0x4d   : > { %s187_s28 = scalar_lea.vmem (!%p795_p12), [#allocation2], %s425_s6 }
  0x51   : > { %612 = dma.done.wait (%p914_p8), %s184_s30, 96  }
  0x52   : > { %614 = vsyncadd (%p914_p8), %s184_s30, 4294967200  ;;  %s193_s25 = scalar_lea.sflag [#allocation6], %s835_s5  ;;  %s196_s7 = scalar_lea.vmem [#allocation5], %s425_s6 }
  0x53   : > { %616 = dma.done.wait (%p914_p8), %s193_s25, 96  }
  0x54   : > { %618 = vsyncadd (%p914_p8), %s193_s25, 4294967200  ;;  %v222_v0 = vld [vmem:[%s187_s28] sm:$0x3]  ;;  %v223_v1 = vld [vmem:[%s187_s28 + $0x2] sm:$0x3]  ;;  %vm275_vm0 = vcmask 1041408   ;;  %v283_v54 = vlaneseq }
  0x55   : > { %v224_v2 = vld [vmem:[%s187_s28 + $0x4] sm:$0x3]  ;;  %v225_v3 = vmul.f32 3.132, %v222_v0  ;;  %v226_v4 = vmul.f32 12.5363, %v223_v1 }
  0x56   : > { %v228_v5 = vmul.f32 3.332, %v224_v2  ;;  %v245_v7 = vld [vmem:[%s196_s7] sm:$0x3]  ;;  %v246_v8 = vld [vmem:[%s196_s7 + $0x2] sm:$0x3] }
  0x57   : > { %v227_v6 = vadd.f32 %v226_v4, %v225_v3  ;;  %v247_v9 = vld [vmem:[%s196_s7 + $0x4] sm:$0x3]  ;;  %v248_v11 = vmul.f32 3.132, %v245_v7  ;;  %v249_v12 = vmul.f32 12.5363, %v246_v8 }
  0x58   : > { %v251_v13 = vmul.f32 3.332, %v247_v9  ;;  %v233_v18 = vmul.f32 3.1430118, %v222_v0  ;;  %v234_v20 = vmul.f32 1.9982275, %v223_v1 }
  0x59   : > { %v229_v10 = vadd.f32 %v228_v5, %v227_v6  ;;  %v250_v15 = vadd.f32 %v249_v12, %v248_v11  ;;  %v239_v21 = vmul.f32 2.5497177, %v222_v0  ;;  %v240_v22 = vmul.f32 11.764588, %v223_v1  ;;  %s416_s21 = sshll.u32 %s835_s5, 3  ;;  %s418_s19 = sshll.u32 %s637_s12, 7 }
  0x5a   : > { %v256_v24 = vmul.f32 3.1430118, %v245_v7  ;;  %v257_v25 = vmul.f32 1.9982275, %v246_v8  ;;  %v262_v26 = vmul.f32 2.5497177, %v245_v7  ;;  %v235_v28 = vadd.f32 %v234_v20, %v233_v18  ;;  %s855_s4 = scalar_lea.hbm %s904_s2, %s418_s19 }
  0x5b   : > { %v230_v14 = vmax.f32 %v229_v10, 0.0  ;;  %v252_v17 = vadd.f32 %v251_v13, %v250_v15  ;;  %v263_v27 = vmul.f32 11.764588, %v246_v8  ;;  %v236_v29 = vmul.f32 1.2901334, %v224_v2  ;;  %s221_s8 = scalar_lea.vmem [#allocation7], %s416_s21 }
  0x5c   : > { %v241_v30 = vadd.f32 %v240_v22, %v239_v21  ;;  %v242_v31 = vmul.f32 0.15628235, %v224_v2  ;;  %v258_v32 = vadd.f32 %v257_v25, %v256_v24  ;;  %v259_v33 = vmul.f32 1.2901334, %v247_v9  ;;  %s303_s18 = sshll.u32 %s221_s8, 4  ;;  %s289_s15 = scalar_lea.sflag [#allocation4], %s835_s5  ;;  %s850_s18 = int_to_ptr.vmem [resolvable:$true] %s303_s18 }
  0x5d   : > { %v231_v16 = vadd.f32 1e-06, %v230_v14  ;;  %v253_v19 = vmax.f32 %v252_v17, 0.0  ;;  %v264_v34 = vadd.f32 %v263_v27, %v262_v26  ;;  %v265_v35 = vmul.f32 0.15628235, %v247_v9  ;;  %s559_s26 = scalar_lea.vmem %s850_s18, 128 }
  0x5e   : > { %v237_v36 = vadd.f32 %v236_v29, %v235_v28  ;;  %v243_v37 = vadd.f32 %v242_v31, %v241_v30  ;;  %v260_v39 = vadd.f32 %v259_v33, %v258_v32  ;;  %v284_v57 = vshrl.u32 %v283_v54, 7  ;;  %p560_p0 = scmp.ne.s32.totalorder %s850_s18, %s559_s26  ;;  %p915_p3 = scmp.ne.s32.totalorder %s909_s22, 0 }
  0x5f   : > { %495 = vrcp.f32 %v231_v16  ;;  %v254_v23 = vadd.f32 1e-06, %v253_v19  ;;  %v266_v40 = vadd.f32 %v265_v35, %v264_v34  ;;  %s651_s12 = smov [#allocation7]  }
  0x60   : > { %vm285_vm1 = vcmp.eq.s32.totalorder %v284_v57, 0  ;;  %p561_p12 = pnand %p560_p0, %p915_p3  ;;  %s563_s16 = sshll.u32 %s651_s12, 4  ;;  %s564_s16 = int_to_ptr.vmem [resolvable:$false] %s563_s16 }
  0x61   : > { %497 = vrcp.f32 %v254_v23  ;;  %s565_s20 = scalar_lea.vmem %s564_s16, 256  ;;  %p566_p7 = scmp.lt.s32.totalorder %s850_s18, %s564_s16 }
  0x62   : > { %p562_p13 = pneg %p561_p12  ;;  %p567_p10 = scmp.lt.s32.totalorder %s565_s20, %s559_s26 }
  0x64   : > { %p568_p9 = por %p567_p10, %p566_p7 }
  0x66   : > { %p569_p11 = pnand %p568_p9, %p562_p13 }
  0x69   : > { %v496_v38 = vpop.eup %495 }
  0x6a   : > { %v238_v41 = vmul.f32 %v496_v38, %v237_v36  ;;  %v244_v42 = vmul.f32 %v496_v38, %v243_v37 }
  0x6b   : > { %v498_v43 = vpop.eup %497 }
  0x6c   : > { %v261_v44 = vmul.f32 %v498_v43, %v260_v39  ;;  %v267_v45 = vmul.f32 %v498_v43, %v266_v40 }
  0x6e   : > { %v268_v46 = vsub.f32 %v238_v41, %v261_v44  ;;  %v270_v47 = vsub.f32 %v244_v42, %v267_v45 }
  0x70   : > { %v269_v48 = vand.u32 2147483647, %v268_v46  ;;  %v271_v49 = vand.u32 2147483647, %v270_v47 }
  0x72   : > { %v272_v50 = vadd.f32 %v271_v49, %v269_v48 }
  0x74   : > { %v273_v51 = vmul.f32 0.5, %v272_v50 }
  0x76   : > { %v276_v52 = vsel %vm275_vm0, %v273_v51, 0.0 }
  0x77   : > { %v277_v53 = vrot.slane %v276_v52, 4 }
  0x79   : > { %v278_v55 = vadd.f32 %v277_v53, %v276_v52 }
  0x7b   : > { %v279_v56 = vrot.slane %v278_v55, 2 }
  0x7d   : > { %v280_v58 = vadd.f32 %v279_v56, %v278_v55 }
  0x7f   : > { %v281_v59 = vrot.slane %v280_v58, 1 }
  0x81   : > { %v282_v60 = vadd.f32 %v281_v59, %v280_v58 }
  0x83   : > { %v286_v61 = vsel %vm285_vm1, %v282_v60, 0.0 }
  0x84   : > { %287 = vst [vmem:[%s221_s8] sm:$0xff] %v286_v61 }
  0x85   : > { %572 = shalt.err (!%p569_p11)
}
  0x86   : > { %s573_s27 = scalar_lea.hbm %s855_s4, 128  ;;  %s577_s30 = scalar_lea.hbm %s904_s2, 256 }
  0x87   : > { %p574_p1 = scmp.ne.s32.totalorder %s855_s4, %s573_s27  ;;  %p578_p4 = scmp.lt.u32.totalorder %s855_s4, %s904_s2 }
  0x88   : > { %p579_p6 = scmp.lt.u32.totalorder %s577_s30, %s573_s27  ;;  %p581_p0 = scmp.lt.u32.totalorder %s573_s27, %s855_s4 }
  0x89   : > { %p575_p5 = pnand %p574_p1, %p915_p3 }
  0x8a   : > { %p580_p8 = por %p579_p6, %p578_p4 }
  0x8b   : > { %p576_p2 = pneg %p575_p5 }
  0x8c   : > { %p582_p12 = por %p581_p0, %p580_p8 }
  0x8e   : > { %p583_p13 = pnand %p582_p12, %p576_p2 }
  0x90   : > { %586 = shalt.err (!%p583_p13)
}
  0x91   : > { %430 = dma.vmem_to_hbm [thread:$0]  (%p915_p3), %s850_s18, 128, %s855_s4, %s289_s15  }
  0x92 PF: > { %s315_s7 = sand.u32 1, %s625_s9   ;;  %p916_p7 = scmp.ne.s32.totalorder %s910_s24, 0 }
  0x93   : > { %p917_p10 = scmp.ge.s32.totalorder %s645_s14, 2  ;;  %s316_s21 = scalar_lea.sflag [#allocation4], %s315_s7 }
  0x95   : > { %p440_p9 = pnand %p917_p10, %p916_p7 }
  0x97   : > { %620 = dma.done.wait (!%p440_p9), %s316_s21, 128  }
  0x98   : > { %622 = vsyncadd (!%p440_p9), %s316_s21, 4294967168  ;;  %s21_s14 = sadd.s32 1, %s645_s14   ;;  %s918_s9 = smov %s629_s10 }
  0x99   : > { %p18_p11 = scmp.ge.s32.totalorder %s21_s14, 4   ;;  %s919_s10 = smov %s633_s11 }
  0x9a   : > { %s920_s11 = smov %s723_s23  ;;  %s921_s12 = smov %s641_s13 }
  0x9b   : > { %s922_s13 = smov %s924_s17  ;;  %20 = sbr.rel (!%p18_p11) target bundleno = 8 (0x8), region = 86 }
  0xa2   :  { %321 = vsyncpa [#allocation3], 1 }
  0xa3   :  { %323 = vsyncpa [#allocation3 + $0x1], 1 }
  0xa4   :  { %324 = vsyncpa [#allocation6], 1 }
  0xa5   :  { %326 = vsyncpa [#allocation6 + $0x1], 1 }
  0xa6   :  { %327 = vsyncpa [#allocation4], 1 }
  0xa7   :  { %329 = vsyncpa [#allocation4 + $0x1], 1 }

</bundles_post_ra>
